<compile_context>
chip_gen: v5e
topology: v5e:2x2
jax: 0.10.0
libtpu: 0.0.40
codegen_flags: <defaults>
</compile_context>

<pallas_src>
import functools

import jax
import jax.numpy as jnp
from jax import lax
from jax.experimental import pallas as pl
from jax.experimental.pallas import tpu as pltpu


def _cdiv(a, b):
    return -(-a // b)


def _round_up(x, m):
    return _cdiv(x, m) * m


# --------------------------------------------------------------------------- #
# Kernels
# --------------------------------------------------------------------------- #
def _sum_abs_err_kernel(*refs, rows, tile_rows, sub, mask_rows, has_mask):
    """Accumulate per-(batch, chunk, lane) sums of |target - forecast| [* mask].

    Inputs are (tile_rows, L) blocks of the (optionally lane-packed)
    [B, rows, L] tensors.  The output block is a resident (sub, L) accumulator;
    sub == 8 keeps the accumulation as whole-vreg VPU adds (no per-tile XLU
    reduce), the sublane collapse happens in the JAX epilogue.
    """
    if has_mask:
        f_ref, t_ref, m_ref, out_ref = refs
    else:
        f_ref, t_ref, out_ref = refs
        m_ref = None

    c = pl.program_id(1)
    t = pl.program_id(2)

    @pl.when(t == 0)
    def _():
        out_ref[...] = jnp.zeros_like(out_ref)

    e = jnp.abs(t_ref[...].astype(jnp.float32) - f_ref[...].astype(jnp.float32))
    if m_ref is not None:
        e = e * m_ref[...].astype(jnp.float32)

    if mask_rows:
        # Ragged time tail and/or clamped duplicate chunk tiles: zero out any
        # row whose global index is past the real row count.
        tiles_per_chunk = pl.num_programs(2)
        start = (c * tiles_per_chunk + t) * tile_rows
        row_ids = start + lax.broadcasted_iota(jnp.int32, e.shape, 0)
        e = jnp.where(row_ids < rows, e, 0.0)

    if sub == 8:
        # (tile_rows, L) -> (tile_rows//8, 8, L): each (8, L) slab is exactly one
        # vreg row-group, so the reduce over axis 0 is plain whole-vreg VPU adds.
        out_ref[...] += jnp.sum(e.reshape(tile_rows // 8, 8, e.shape[-1]), axis=0)
    else:
        out_ref[...] += jnp.sum(e, axis=0, keepdims=True)


def _inv_masep_kernel(ins_ref, out_ref, *, freq, t_i, use_roll):
    """inv_masep[f] = divide_no_nan(1, mean_t |x[t+freq, f] - x[t, f]|)."""
    n = t_i - freq
    if use_roll:
        x = ins_ref[...].astype(jnp.float32)                     # (T_i, F)
        # shifted[t] = x[(t + freq) % T_i] via XLU rotate (no unaligned copy).
        shifted = pltpu.roll(x, shift=t_i - freq, axis=0)
        d = jnp.abs(shifted - x)
        row_ids = lax.broadcasted_iota(jnp.int32, d.shape, 0)
        d = jnp.where(row_ids < n, d, 0.0)                       # drop wrapped rows
        s = jnp.sum(d, axis=0, keepdims=True)                    # (1, F)
    else:
        # T_i not sublane-aligned: fall back to the (known-good) sliced loads.
        a = ins_ref[pl.ds(0, n), :].astype(jnp.float32)
        b = ins_ref[pl.ds(freq, n), :].astype(jnp.float32)
        s = jnp.sum(jnp.abs(a - b), axis=0, keepdims=True)

    masep = s * (1.0 / n)
    nonzero = masep > 0.0
    # Guarded denominator (no inf ever produced): matches divide_no_nan for
    # 0/1 masks and keeps gradients NaN-free if anyone differentiates this.
    out_ref[...] = jnp.where(nonzero, 1.0 / jnp.where(nonzero, masep, 1.0), 0.0)


# --------------------------------------------------------------------------- #
# Wrapper
# --------------------------------------------------------------------------- #
_TILE_BUDGET_BYTES = 2 * 1024 * 1024       # per input, per pipeline buffer
_VMEM_LIMIT_BYTES = 32 * 1024 * 1024       # safe on v5e/v6e (128 MiB) and v7x (64 MiB)
_INSAMPLE_FALLBACK_BYTES = 12 * 1024 * 1024


def mase_loss(forecast, target, insample=None, mask=None, freq: int = 1,
              tile_budget_bytes: int = _TILE_BUDGET_BYTES):
    """MASE loss, matching MASELoss.forward semantics. Returns a 0-d float32."""
    B, T_o, F = forecast.shape
    n_elems = B * T_o * F

    # ---- lane-dense packing (only when it is a pad-free reshape) ------------
    if F % 128 == 0:
        R = 1
    elif (128 % F == 0) and (T_o % (128 // F) == 0):
        R = 128 // F                      # fold R time steps per 128-lane row
    else:
        R = 1
        # TODO(synk): lcm(F,128) group packing for F like 96/200 (dead lanes now).
    L = R * F
    rows = T_o // R

    # ---- tile sizing: per-buffer byte budget, balanced tiles, no padding ----
    itemsize = jnp.dtype(forecast.dtype).itemsize
    row_bytes = L * itemsize
    max_tile_rows = max(8, (tile_budget_bytes // row_bytes) // 8 * 8)
    if rows <= max_tile_rows:
        tile_rows = rows                  # single tile == full row dim
    else:
        n_t0 = _cdiv(rows, max_tile_rows)
        tile_rows = _round_up(_cdiv(rows, n_t0), 8)
    n_t = _cdiv(rows, tile_rows)
    sub = 8 if tile_rows % 8 == 0 else 1

    # ---- v7x megacore: give the 2nd TensorCore work when B is odd -----------
    n_chunks = 2 if (B % 2 == 1 and n_t >= 2) else 1
    tiles_per_chunk = _cdiv(n_t, n_chunks)
    mask_rows = (n_chunks * tiles_per_chunk * tile_rows) > rows

    def pack(x):
        return x if R == 1 else x.reshape(B, rows, L)

    def in_map(b, c, t):
        # Clamp so duplicate (fully row-masked) tiles never index out of bounds.
        return (b, jnp.minimum(c * tiles_per_chunk + t, n_t - 1), 0)

    grid = (B, n_chunks, tiles_per_chunk)
    io_spec = pl.BlockSpec((None, tile_rows, L), in_map)
    out_spec = pl.BlockSpec((None, None, sub, L), lambda b, c, t: (b, c, 0, 0))
    cparams = pltpu.CompilerParams(
        dimension_semantics=("parallel", "parallel", "arbitrary"),
        vmem_limit_bytes=_VMEM_LIMIT_BYTES,
    )
    partial_shape = jax.ShapeDtypeStruct((B, n_chunks, sub, L), jnp.float32)

    has_mask = (mask is not None) and (insample is not None)
    kernel = functools.partial(
        _sum_abs_err_kernel, rows=rows, tile_rows=tile_rows, sub=sub,
        mask_rows=mask_rows, has_mask=has_mask)

    operands = [pack(forecast), pack(target)]
    in_specs = [io_spec, io_spec]
    if has_mask:
        operands.append(pack(mask))
        in_specs.append(io_spec)

    partials = pl.pallas_call(
        kernel,
        out_shape=partial_shape,
        grid=grid,
        in_specs=in_specs,
        out_specs=out_spec,
        compiler_params=cparams,
    )(*operands)

    if insample is None:
        # F.l1_loss(forecast, target) == mean(|forecast - target|); mask ignored.
        return (jnp.sum(partials) / n_elems).astype(jnp.float32)

    # ---- inv_masep = divide_no_nan(1, masep) per (batch, feature) -> [B, F] --
    _, T_i, _ = insample.shape
    if freq >= T_i:
        # Empty shifted slice -> masep is NaN -> divide_no_nan zeroes everything.
        inv_masep = jnp.zeros((B, F), jnp.float32)
    elif T_i * F * jnp.dtype(insample.dtype).itemsize > _INSAMPLE_FALLBACK_BYTES:
        # TODO(synk): tile T_i inside the kernel instead of this tiny XLA fallback.
        masep = jnp.mean(jnp.abs(insample[:, freq:].astype(jnp.float32)
                                 - insample[:, :-freq].astype(jnp.float32)), axis=1)
        inv_masep = jnp.where(masep > 0.0,
                              1.0 / jnp.where(masep > 0.0, masep, 1.0), 0.0)
    else:
        use_roll = (T_i % 8 == 0)
        inv_masep = pl.pallas_call(
            functools.partial(_inv_masep_kernel, freq=freq, t_i=T_i,
                              use_roll=use_roll),
            out_shape=jax.ShapeDtypeStruct((B, 1, F), jnp.float32),
            grid=(B,),
            in_specs=[pl.BlockSpec((None, T_i, F), lambda b: (b, 0, 0))],
            out_specs=pl.BlockSpec((None, 1, F), lambda b: (b, 0, 0)),
            compiler_params=pltpu.CompilerParams(
                dimension_semantics=("parallel",),
                vmem_limit_bytes=_VMEM_LIMIT_BYTES,
            ),
        )(insample)[:, 0, :]

    # Tiny [B, F] epilogue: collapse chunk/sublane partials, unpack lanes back
    # to features, weight by inv_masep, global mean.
    per_feat = partials.sum(axis=(1, 2)).reshape(B, R, F).sum(axis=1)   # [B, F]
    loss = jnp.sum(per_feat * inv_masep) / n_elems
    return loss.astype(jnp.float32)


# --------------------------------------------------------------------------- #
# Pure-JAX reference (mirrors the PyTorch module)
# --------------------------------------------------------------------------- #
def _mase_ref(forecast, target, insample=None, mask=None, freq=1):
    if insample is None:
        return jnp.mean(jnp.abs(forecast - target))
    if mask is None:
        mask = jnp.ones_like(target)
    masep = jnp.mean(jnp.abs(insample[:, freq:] - insample[:, :-freq]), axis=1)
    r = mask / masep[:, None]
    r = jnp.where(jnp.isnan(r) | jnp.isinf(r), 0.0, r)
    return jnp.mean(jnp.abs(target - forecast) * r)


if __name__ == "__main__":
    key = jax.random.PRNGKey(0)
    k1, k2, k3, k4, k5, k6, k7, k8 = jax.random.split(key, 8)

    # ---- Case 1: packed lanes (F=32 -> R=4), masked, zero-masep feature -----
    B, T_O, T_I, F = 2, 8, 16, 32
    forecast = jax.random.normal(k1, (B, T_O, F), dtype=jnp.float32)
    target = jax.random.normal(k2, (B, T_O, F), dtype=jnp.float32)
    insample = jax.random.normal(k3, (B, T_I, F), dtype=jnp.float32)
    insample = insample.at[:, :, 0].set(1.0)   # masep == 0 -> divide_no_nan path
    mask = (jax.random.uniform(k4, (B, T_O, F)) > 0.2).astype(jnp.float32)

    loss = jax.block_until_ready(mase_loss(forecast, target, insample, mask, freq=1))
    ref = _mase_ref(forecast, target, insample, mask, freq=1)
    assert jnp.allclose(loss, ref, rtol=1e-4, atol=1e-5), (loss, ref)

    # ---- Case 2: mask=None (no ones tensor materialized) --------------------
    loss_nm = jax.block_until_ready(mase_loss(forecast, target, insample, None, freq=1))
    ref_nm = _mase_ref(forecast, target, insample, None, freq=1)
    assert jnp.allclose(loss_nm, ref_nm, rtol=1e-4, atol=1e-5), (loss_nm, ref_nm)

    # ---- Case 3: insample=None fallback (plain L1) ---------------------------
    l1 = jax.block_until_ready(mase_loss(forecast, target))
    l1_ref = jnp.mean(jnp.abs(forecast - target))
    assert jnp.allclose(l1, l1_ref, rtol=1e-4, atol=1e-5), (l1, l1_ref)

    # ---- Case 4: forced multi-tile + ragged tail + odd-B chunking + (8,L) acc
    B2, T_O2, T_I2, F2 = 1, 37, 24, 24
    fc2 = jax.random.normal(k5, (B2, T_O2, F2), dtype=jnp.float32)
    tg2 = jax.random.normal(k6, (B2, T_O2, F2), dtype=jnp.float32)
    ins2 = jax.random.normal(k7, (B2, T_I2, F2), dtype=jnp.float32)
    mk2 = (jax.random.uniform(k8, (B2, T_O2, F2)) > 0.3).astype(jnp.float32)
    loss2 = jax.block_until_ready(
        mase_loss(fc2, tg2, ins2, mk2, freq=2, tile_budget_bytes=1024))
    ref2 = _mase_ref(fc2, tg2, ins2, mk2, freq=2)
    assert jnp.allclose(loss2, ref2, rtol=1e-4, atol=1e-5), (loss2, ref2)

    # ---- Case 5: T_i not sublane-aligned (inv_masep slice fallback path) ----
    ins3 = jax.random.normal(k7, (B, 13, F), dtype=jnp.float32)
    loss3 = jax.block_until_ready(mase_loss(forecast, target, ins3, mask, freq=1))
    ref3 = _mase_ref(forecast, target, ins3, mask, freq=1)
    assert jnp.allclose(loss3, ref3, rtol=1e-4, atol=1e-5), (loss3, ref3)

    print("KERNEL_OK")
</pallas_src>

<mosaic_0001>
module attributes {stable_mosaic.version = 11 : i64} {
  func.func @_sum_abs_err_kernel(%arg0: i32, %arg1: i32, %arg2: i32, %arg3: memref<1x2x128xf32, #tpu.memory_space<vmem>>, %arg4: memref<1x2x128xf32, #tpu.memory_space<vmem>>, %arg5: memref<1x2x128xf32, #tpu.memory_space<vmem>>, %arg6: memref<1x1x1x128xf32, #tpu.memory_space<vmem>>) attributes {dimension_semantics = [#tpu.dimension_semantics<parallel>, #tpu.dimension_semantics<parallel>, #tpu.dimension_semantics<arbitrary>], iteration_bounds = array<i64: 2, 1, 1>, scalar_prefetch = 0 : i64, scratch_operands = 0 : i64, tpu.core_type = #tpu.core_type<tc>, window_params = [{transform_indices = @transform_0, window_bounds = array<i64: 1, 2, 128>}, {transform_indices = @transform_1, window_bounds = array<i64: 1, 2, 128>}, {transform_indices = @transform_2, window_bounds = array<i64: 1, 2, 128>}, {transform_indices = @transform_3, window_bounds = array<i64: 1, 1, 1, 128>}]} {
    %c0_i32 = arith.constant 0 : i32
    %0 = arith.cmpi eq, %arg2, %c0_i32 : i32
    %1 = arith.extui %0 : i1 to i32
    %c0_i32_0 = arith.constant 0 : i32
    %2 = arith.cmpi ne, %1, %c0_i32_0 : i32
    scf.if %2 {
      %cst_17 = arith.constant 0.000000e+00 : f32
      %20 = vector.broadcast %cst_17 : f32 to vector<1x128xf32>
      %c0_18 = arith.constant 0 : index
      %c0_19 = arith.constant 0 : index
      %c0_20 = arith.constant 0 : index
      %c0_21 = arith.constant 0 : index
      %21 = vector.load %arg6[%c0_18, %c0_19, %c0_20, %c0_21] : memref<1x1x1x128xf32, #tpu.memory_space<vmem>>, vector<1x1x1x128xf32>
      %22 = vector.shape_cast %21 : vector<1x1x1x128xf32> to vector<1x128xf32>
      %23 = vector.shape_cast %20 : vector<1x128xf32> to vector<1x1x1x128xf32>
      tpu.vector_store %arg6[%c0_18, %c0_19, %c0_20, %c0_21], %23 {strides = array<i32>} : memref<1x1x1x128xf32, #tpu.memory_space<vmem>>, vector<1x1x1x128xf32>,
    } else {
    }
    %c0 = arith.constant 0 : index
    %c0_1 = arith.constant 0 : index
    %c0_2 = arith.constant 0 : index
    %3 = vector.load %arg4[%c0, %c0_1, %c0_2] : memref<1x2x128xf32, #tpu.memory_space<vmem>>, vector<1x2x128xf32>
    %4 = vector.shape_cast %3 : vector<1x2x128xf32> to vector<2x128xf32>
    %c0_3 = arith.constant 0 : index
    %c0_4 = arith.constant 0 : index
    %c0_5 = arith.constant 0 : index
    %5 = vector.load %arg3[%c0_3, %c0_4, %c0_5] : memref<1x2x128xf32, #tpu.memory_space<vmem>>, vector<1x2x128xf32>
    %6 = vector.shape_cast %5 : vector<1x2x128xf32> to vector<2x128xf32>
    %7 = arith.subf %4, %6 : vector<2x128xf32>
    %8 = math.absf %7 : vector<2x128xf32>
    %c0_6 = arith.constant 0 : index
    %c0_7 = arith.constant 0 : index
    %c0_8 = arith.constant 0 : index
    %9 = vector.load %arg5[%c0_6, %c0_7, %c0_8] : memref<1x2x128xf32, #tpu.memory_space<vmem>>, vector<1x2x128xf32>
    %10 = vector.shape_cast %9 : vector<1x2x128xf32> to vector<2x128xf32>
    %11 = arith.mulf %8, %10 : vector<2x128xf32>
    %c0_9 = arith.constant 0 : index
    %c0_10 = arith.constant 0 : index
    %c0_11 = arith.constant 0 : index
    %c0_12 = arith.constant 0 : index
    %12 = vector.load %arg6[%c0_9, %c0_10, %c0_11, %c0_12] : memref<1x1x1x128xf32, #tpu.memory_space<vmem>>, vector<1x1x1x128xf32>
    %13 = vector.shape_cast %12 : vector<1x1x1x128xf32> to vector<1x128xf32>
    %cst = arith.constant dense<0.000000e+00> : vector<128xf32>
    %14 = vector.multi_reduction <add>, %11, %cst [0] : vector<2x128xf32> to vector<128xf32>
    %15 = vector.shape_cast %14 : vector<128xf32> to vector<1x128xf32>
    %16 = arith.addf %13, %15 : vector<1x128xf32>
    %c0_13 = arith.constant 0 : index
    %c0_14 = arith.constant 0 : index
    %c0_15 = arith.constant 0 : index
    %c0_16 = arith.constant 0 : index
    %17 = vector.load %arg6[%c0_13, %c0_14, %c0_15, %c0_16] : memref<1x1x1x128xf32, #tpu.memory_space<vmem>>, vector<1x1x1x128xf32>
    %18 = vector.shape_cast %17 : vector<1x1x1x128xf32> to vector<1x128xf32>
    %19 = vector.shape_cast %16 : vector<1x128xf32> to vector<1x1x1x128xf32>
    tpu.vector_store %arg6[%c0_13, %c0_14, %c0_15, %c0_16], %19 {strides = array<i32>} : memref<1x1x1x128xf32, #tpu.memory_space<vmem>>, vector<1x1x1x128xf32>,
    return
  }
  func.func @transform_0(%arg0: i32, %arg1: i32, %arg2: i32) -> (i32, i32, i32) {
    %c1_i32 = arith.constant 1 : i32
    %0 = arith.muli %arg1, %c1_i32 : i32
    %1 = arith.addi %0, %arg2 : i32
    %c0_i32 = arith.constant 0 : i32
    %2 = arith.minsi %1, %c0_i32 : i32
    %c0_i32_0 = arith.constant 0 : i32
    %c0_i32_1 = arith.constant 0 : i32
    return %arg0, %2, %c0_i32_0 : i32, i32, i32
  }
  func.func @transform_1(%arg0: i32, %arg1: i32, %arg2: i32) -> (i32, i32, i32) {
    %c1_i32 = arith.constant 1 : i32
    %0 = arith.muli %arg1, %c1_i32 : i32
    %1 = arith.addi %0, %arg2 : i32
    %c0_i32 = arith.constant 0 : i32
    %2 = arith.minsi %1, %c0_i32 : i32
    %c0_i32_0 = arith.constant 0 : i32
    %c0_i32_1 = arith.constant 0 : i32
    return %arg0, %2, %c0_i32_0 : i32, i32, i32
  }
  func.func @transform_2(%arg0: i32, %arg1: i32, %arg2: i32) -> (i32, i32, i32) {
    %c1_i32 = arith.constant 1 : i32
    %0 = arith.muli %arg1, %c1_i32 : i32
    %1 = arith.addi %0, %arg2 : i32
    %c0_i32 = arith.constant 0 : i32
    %2 = arith.minsi %1, %c0_i32 : i32
    %c0_i32_0 = arith.constant 0 : i32
    %c0_i32_1 = arith.constant 0 : i32
    return %arg0, %2, %c0_i32_0 : i32, i32, i32
  }
  func.func @transform_3(%arg0: i32, %arg1: i32, %arg2: i32) -> (i32, i32, i32, i32) {
    %c0_i32 = arith.constant 0 : i32
    %c0_i32_0 = arith.constant 0 : i32
    %c0_i32_1 = arith.constant 0 : i32
    return %arg0, %arg1, %c0_i32, %c0_i32_0 : i32, i32, i32, i32
  }
}

</mosaic_0001>

<bundles_post_ra>
// kernel: tpu_custom_call.1
= control target key start
LH: loop header
LB: loop body
LE: loop exit
PB: predicated region body
PF: predicated region fallthrough
CT: control target
= control target key end

     0   :  { %s929_s0 = inlined_call_operand.hbm [shape: f32[2,2,128], index: 0, kind: input, shape index: {}]   ;;  %s930_s1 = inlined_call_operand.hbm [shape: f32[2,2,128], index: 1, kind: input, shape index: {}]   ;;  %s931_s2 = inlined_call_operand.hbm [shape: f32[2,2,128], index: 2, kind: input, shape index: {}]   ;;  %s932_s3 = inlined_call_operand.hbm [shape: f32[2,1,1,128], index: 3, kind: output, shape index: {}]  }
   0x1   :  { %935 = sst [smem:[#allocation15_spill]] %s930_s1 }
   0x2   :  { %8 = vsyncpa [#allocation3], 0 }
   0x3   :  { %10 = vsyncpa [#allocation3 + $0x1], 0 }
   0x4   :  { %11 = vsyncpa [#allocation6], 0 }
   0x5   :  { %13 = vsyncpa [#allocation6 + $0x1], 0 }
   0x6   :  { %14 = vsyncpa [#allocation4], 0 }
   0x7   :  { %16 = vsyncpa [#allocation4 + $0x1], 0  ;;  %s776_s12 = smov 0   ;;  %s778_s13 = smov 0  }
   0x8   :  { %s780_s14 = smov 0   ;;  %s782_s15 = smov 0  }
   0x9   :  { %s784_s16 = smov 0   ;;  %s786_s17 = smov 0  }
   0xa LB: > { %936 = sst [smem:[#allocation12_spill]] %s749_s16  ;;  %s807_s18 = sadd.s32 4294967295, %s753_s17   ;;  %s753_s17 = sphi %s786_s17, %s22_s17   ;;  %s749_s16 = sphi %s784_s16, %s948_s16   ;;  %s745_s15 = sphi %s782_s15, %s947_s15   ;;  %s741_s14 = sphi %s780_s14, %s951_s14   ;;  %s737_s13 = sphi %s778_s13, %s950_s13   ;;  %s733_s12 = sphi %s776_s12, %s949_s12  }
   0xb   : > { %s489_s19 = sadd.s32 4294967294, %s753_s17   ;;  %s41_s20 = sadd.s32 1, %s749_s16 }
   0xc   : > { %s56_s21 = sadd.s32 1, %s741_s14  ;;  %p43_p0 = scmp.ge.s32.totalorder %s41_s20, 2 }
   0xd   : > { %p63_p1 = scmp.ne.s32.totalorder %s741_s14, %s737_s13  ;;  %p64_p2 = scmp.eq.s32.totalorder %s753_s17, 0 }
   0xe   : > { %p69_p3 = scmp.ne.s32.totalorder %s737_s13, %s733_s12  ;;  %s953_s20 = smov (%p43_p0, %s41_s20), 0 }
   0xf   : > { %937 = sst [smem:[#allocation13_spill]] %s953_s20  ;;  %p819_p4 = por %p64_p2, %p63_p1 }
  0x10   : > { %p70_p5 = scmp.eq.s32.totalorder %s807_s18, 0  ;;  %s51_s23 = ssub.s32 %s749_s16, %s953_s20 }
  0x11   : > { %p163_p6 = scmp.eq.s32.totalorder %s807_s18, 1  ;;  %p54_p7 = scmp.eq.s32.totalorder %s51_s23, 0 }
  0x12   : > { %p827_p8 = por %p70_p5, %p69_p3  ;;  %p169_p10 = scmp.eq.s32.totalorder %s489_s19, 1 }
  0x13   : > { %p831_p9 = por %p163_p6, %p63_p1  ;;  %p491_p12 = scmp.ge.s32.totalorder %s753_s17, 2 }
  0x14   : > { %s836_s26 = scalar_select %p54_p7, %s741_s14, %s56_s21  }
  0x15   : > { %p838_p11 = por %p169_p10, %p69_p3  ;;  %p526_p13 = scmp.lt.s32.totalorder %s753_s17, 2 }
  0x16   : > { %941 = sst [smem:[#allocation14_spill]] %s836_s26  ;;  %s189_s28 = sand.u32 1, %s741_s14  }
  0x17   : > { %s492_s29 = sshll.u32 %s189_s28, 1  ;;  %s493_s30 = sshll.u32 %s749_s16, 1 }
  0x18   : > { %p848_p0 = pnand %p526_p13, %p819_p4  ;;  %s212_s5 = sand.u32 1, %s753_s17  }
  0x19   : > { %s944_s1 = sld [smem:[#allocation15_spill]]  ;;  %s216_s10 = scalar_lea.vmem [#allocation5], %s492_s29 }
  0x1a   : > { %s228_s11 = sshll.u32 %s216_s10, 4  ;;  %s213_s19 = scalar_lea.sflag [#allocation6], %s212_s5  ;;  %s229_s11 = int_to_ptr.vmem [resolvable:$true] %s228_s11 }
  0x1b   : > { %p498_p1 = scmp.ge.s32.totalorder %s753_s17, 1  ;;  %p256_p2 = scmp.lt.s32.totalorder %s753_s17, 3 }
  0x1c   : > { %s201_s6 = scalar_lea.hbm %s929_s0, %s493_s30  ;;  %s190_s10 = scalar_lea.sflag [#allocation3], %s189_s28 }
  0x1d   : > { %p860_p3 = pnand %p498_p1, %p256_p2  ;;  %s203_s7 = sshll.u32 %s201_s6, 4  ;;  %s204_s7 = int_to_ptr.hbm [resolvable:$true] %s203_s7 }
  0x1e   : > { %s239_s16 = scalar_lea.vmem [#allocation7], %s492_s29  ;;  %s877_s22 = sand.u32 (!%p860_p3), 1, %s737_s13  }
  0x1f   : > { %s224_s8 = scalar_lea.hbm %s944_s1, %s493_s30  ;;  %s251_s26 = sshll.u32 %s239_s16, 4  ;;  %s252_s26 = int_to_ptr.vmem [resolvable:$true] %s251_s26 }
  0x20   : > { %s226_s9 = sshll.u32 %s224_s8, 4  ;;  %s193_s8 = scalar_lea.vmem [#allocation2], %s492_s29  ;;  %s227_s9 = int_to_ptr.hbm [resolvable:$true] %s226_s9 }
  0x21   : > { %518 = dma.hbm_to_vmem [thread:$0]  (!%p848_p0), %s227_s9, 32, %s229_s11, %s213_s19  }
  0x22   : > { %s205_s1 = sshll.u32 %s193_s8, 4  ;;  %s247_s11 = scalar_lea.hbm %s931_s2, %s493_s30  ;;  %s206_s1 = int_to_ptr.vmem [resolvable:$true] %s205_s1 }
  0x23   : > { %515 = dma.hbm_to_vmem [thread:$0]  (!%p848_p0), %s204_s7, 32, %s206_s1, %s190_s10  }
  0x24   : > { %s249_s20 = sshll.u32 %s247_s11, 4  ;;  %260 = sbr.rel (%p860_p3) target bundleno = 71 (0x47), region = 32  ;;  %s250_s20 = int_to_ptr.hbm [resolvable:$true] %s249_s20 }
  0x25   : > { %521 = dma.hbm_to_vmem [thread:$0]  (!%p848_p0), %s250_s20, 32, %s252_s26, %s213_s19  }
  0x26   : > { %s499_s1 = sshll.u32 (!%p860_p3), %s877_s22, 1  ;;  %s263_s28 = scalar_lea.sflag (!%p860_p3), [#allocation3], %s877_s22 }
  0x27   : > { %s266_s23 = scalar_lea.vmem (!%p860_p3), [#allocation2], %s499_s1 }
  0x29   : > { %720 = dma.done.wait (%p827_p8), %s263_s28, 32  }
  0x2a   : > { %722 = vsyncadd (%p827_p8), %s263_s28, 4294967264  ;;  %s272_s16 = sand.u32 1, %s807_s18   ;;  %s276_s26 = scalar_lea.vmem [#allocation5], %s499_s1 }
  0x2b   : > { %s273_s20 = scalar_lea.sflag [#allocation6], %s272_s16 }
  0x2c   : > { %724 = dma.done.wait (%p827_p8), %s273_s20, 64  }
  0x2d   : > { %726 = vsyncadd (%p827_p8), %s273_s20, 4294967232  ;;  %s318_s29 = scalar_lea.vmem [#allocation8], %s877_s22  ;;  %v755_v0 = vmov 0.0   ;;  %v333_v1 = vld [vmem:[%s276_s26] sm:$0x3]  ;;  %s286_s30 = scalar_lea.vmem [#allocation7], %s499_s1 }
  0x2e   : > { %332 = vst [vmem:[%s318_s29] sm:$0x1] %v755_v0  ;;  %v334_v2 = vld [vmem:[%s266_s23] sm:$0x3]  ;;  %v337_v4 = vld [vmem:[%s286_s30] sm:$0x3]  ;;  %vm340_vm0 = vcmask 1041408   ;;  %s360_s4 = scalar_lea.hbm %s932_s3, %s745_s15 }
  0x2f   : > { %v335_v3 = vsub.f32 %v333_v1, %v334_v2  ;;  %s362_s19 = sshll.u32 %s318_s29, 4  ;;  %s364_s21 = sshll.u32 %s360_s4, 4  ;;  %s363_s19 = int_to_ptr.vmem [resolvable:$true] %s362_s19  ;;  %s365_s21 = int_to_ptr.hbm [resolvable:$true] %s364_s21 }
  0x30   : > { %s351_s6 = scalar_lea.sflag [#allocation4], %s877_s22  ;;  %s681_s7 = sshra.s32 %s365_s21, 4  ;;  %s682_s7 = int_to_ptr.hbm [resolvable:$true] %s681_s7 }
  0x31   : > { %v336_v5 = vand.u32 2147483647, %v335_v3  ;;  %s683_s8 = scalar_lea.hbm %s682_s7, 1  ;;  %s687_s15 = scalar_lea.hbm %s932_s3, 2 }
  0x32   : > { %p684_p4 = scmp.ne.s32.totalorder %s682_s7, %s683_s8  ;;  %p688_p7 = scmp.lt.s32.totalorder %s682_s7, %s932_s3 }
  0x33   : > { %v338_v6 = vmul.f32 %v337_v4, %v336_v5  ;;  %p689_p8 = scmp.lt.s32.totalorder %s687_s15, %s683_s8 }
  0x34   : > { %p685_p5 = pnand %p684_p4, %p831_p9 }
  0x35   : > { %v341_v7 = vsel %vm340_vm0, %v338_v6, 0.0  ;;  %v339_v13 = vld [vmem:[%s318_s29] sm:$0x1]  ;;  %p690_p10 = por %p689_p8, %p688_p7 }
  0x36   : > { %v342_v8 = vrot.slane %v341_v7, 4  ;;  %p686_p6 = pneg %p685_p5 }
  0x38   : > { %v343_v9 = vadd.f32 %v342_v8, %v341_v7  ;;  %p691_p13 = pnand %p690_p10, %p686_p6 }
  0x3a   : > { %v344_v10 = vrot.slane %v343_v9, 2 }
  0x3c   : > { %v345_v11 = vadd.f32 %v344_v10, %v343_v9 }
  0x3e   : > { %v346_v12 = vrot.slane %v345_v11, 1 }
  0x40   : > { %v347_v14 = vadd.f32 %v346_v12, %v345_v11 }
  0x42   : > { %v348_v15 = vadd.f32 %v347_v14, %v339_v13 }
  0x44   : > { %349 = vst [vmem:[%s318_s29] sm:$0x1] %v348_v15 }
  0x45   : > { %694 = shalt.err (!%p691_p13)
}
  0x46   : > { %510 = dma.vmem_to_hbm [thread:$0]  (%p831_p9), %s363_s19, 16, %s365_s21, %s351_s6  }
  0x47 PF: > { %s376_s22 = sand.u32 1, %s733_s12   ;;  %p523_p0 = pnand %p491_p12, %p838_p11 }
  0x48   : > { %s377_s1 = scalar_lea.sflag [#allocation4], %s376_s22 }
  0x49   : > { %p524_p1 = pneg %p523_p0 }
  0x4b   : > { %728 = dma.done.wait (%p524_p1), %s377_s1, 16  }
  0x4c   : > { %730 = vsyncadd (%p524_p1), %s377_s1, 4294967280  ;;  %s22_s17 = sadd.s32 1, %s753_s17   ;;  %s946_s28 = sld [smem:[#allocation14_spill]] }
  0x4d   : > { %p19_p2 = scmp.ge.s32.totalorder %s22_s17, 4   ;;  %s947_s15 = sld [smem:[#allocation12_spill]] }
  0x4e   : > { %s948_s16 = sld [smem:[#allocation13_spill]]  ;;  %s949_s12 = smov %s737_s13 }
  0x4f   : > { %s950_s13 = smov %s741_s14  ;;  %21 = sbr.rel (!%p19_p2) target bundleno = 10 (0xa), region = 105 }
  0x52   : > { %s951_s14 = smov %s946_s28 }
  0x54   :  { %382 = vsyncpa [#allocation3], 1 }
  0x55   :  { %384 = vsyncpa [#allocation3 + $0x1], 1 }
  0x56   :  { %385 = vsyncpa [#allocation6], 1 }
  0x57   :  { %387 = vsyncpa [#allocation6 + $0x1], 1 }
  0x58   :  { %388 = vsyncpa [#allocation4], 1 }
  0x59   :  { %390 = vsyncpa [#allocation4 + $0x1], 1 }

</bundles_post_ra>
